<compile_context>
chip_gen: v7x
topology: tpu7x:2x2x1
jax: 0.10.0
libtpu: 0.0.40
codegen_flags: <defaults>
</compile_context>

<pallas_src>
import jax
import jax.numpy as jnp
from jax.experimental import pallas as pl
from jax.experimental.pallas import tpu as pltpu


LEAKY_SLOPE = 0.01  # PyTorch nn.LeakyReLU default negative_slope
LANE = 128          # TPU lane width


def _round_up(x, m):
    return ((x + m - 1) // m) * m


def mlp_kernel(x_ref, w1_ref, b1_ref, w2_ref, b2_ref, o_ref):
    # Layer 1: Linear(i_dim -> h_dim) on the MXU (bf16 in, f32 accumulate).
    h = jnp.dot(x_ref[...], w1_ref[...], preferred_element_type=jnp.float32)
    # Bias + LeakyReLU in f32 on the VPU (v5e VPU/EUP have no bf16 support).
    h = h + b1_ref[...]
    h = jnp.where(h > 0, h, LEAKY_SLOPE * h)
    # Dropout: identity in eval mode (inference). No-op.
    # TODO(synk): training-mode dropout would use pltpu.prng_seed / stateful_bernoulli.
    # Layer 2: Linear(h_dim -> o_dim), downcast activation for the MXU only.
    out = jnp.dot(h.astype(w2_ref.dtype), w2_ref[...],
                  preferred_element_type=jnp.float32)
    out = out + b2_ref[...]
    o_ref[...] = out.astype(o_ref.dtype)


def mlp_forward(x, w1, b1, w2, b2, *, tile_b=128, use_bf16=True):
    """Fused MLP forward. x: (B, i_dim); w1: (i_dim, h_dim); w2: (h_dim, o_dim)."""
    # NOTE: at truly tiny problem sizes the per-pallas_call launch overhead
    # dominates; a production dispatcher should fall back to plain XLA below a
    # batch-size threshold. We always take the Pallas path here for testing.
    B, i_dim = x.shape
    i_dim2, h_dim = w1.shape
    h_dim2, o_dim = w2.shape
    assert i_dim == i_dim2 and h_dim == h_dim2
    assert b1.shape == (h_dim,) and b2.shape == (o_dim,)

    out_dtype = x.dtype
    mm_dtype = jnp.bfloat16 if use_bf16 else x.dtype

    # Pad lane dims to multiples of 128 (lane-dense stores, MXU-aligned K/N),
    # pad batch to a multiple of the batch tile. Zero padding is exact:
    # padded K columns / N columns / biases are all zero and sliced off below.
    i_pad = _round_up(i_dim, LANE)
    h_pad = _round_up(h_dim, LANE)
    o_pad = _round_up(o_dim, LANE)

    tb = tile_b if B > tile_b else _round_up(max(B, 1), 8)
    b_pad = _round_up(B, tb)
    grid = (b_pad // tb,)

    xp = jnp.zeros((b_pad, i_pad), mm_dtype).at[:B, :i_dim].set(x.astype(mm_dtype))
    w1p = jnp.zeros((i_pad, h_pad), mm_dtype).at[:i_dim, :h_dim].set(w1.astype(mm_dtype))
    w2p = jnp.zeros((h_pad, o_pad), mm_dtype).at[:h_dim, :o_dim].set(w2.astype(mm_dtype))
    b1p = jnp.zeros((1, h_pad), jnp.float32).at[0, :h_dim].set(b1.astype(jnp.float32))
    b2p = jnp.zeros((1, o_pad), jnp.float32).at[0, :o_dim].set(b2.astype(jnp.float32))

    # VMEM budget: double-buffered x/out tiles + resident weights + intermediate.
    mm_bytes = jnp.dtype(mm_dtype).itemsize
    vmem_need = (2 * tb * i_pad * mm_bytes            # x tile, 2 buffers
                 + 2 * tb * o_pad * 4                 # out tile, 2 buffers
                 + i_pad * h_pad * mm_bytes           # W1 (resident)
                 + h_pad * o_pad * mm_bytes           # W2 (resident)
                 + (h_pad + o_pad) * 4                # biases
                 + tb * h_pad * 4)                    # f32 intermediate h
    vmem_limit = int(min(max(4 * vmem_need, 8 << 20), 48 << 20))

    out_padded = pl.pallas_call(
        mlp_kernel,
        out_shape=jax.ShapeDtypeStruct((b_pad, o_pad), out_dtype),
        grid_spec=pltpu.PrefetchScalarGridSpec(
            num_scalar_prefetch=0,
            grid=grid,
            in_specs=[
                pl.BlockSpec((tb, i_pad), lambda i: (i, 0)),     # x: batch-tiled
                pl.BlockSpec((i_pad, h_pad), lambda i: (0, 0)),  # W1: resident
                pl.BlockSpec((1, h_pad), lambda i: (0, 0)),      # b1: resident
                pl.BlockSpec((h_pad, o_pad), lambda i: (0, 0)),  # W2: resident
                pl.BlockSpec((1, o_pad), lambda i: (0, 0)),      # b2: resident
            ],
            out_specs=pl.BlockSpec((tb, o_pad), lambda i: (i, 0)),
        ),
        compiler_params=pltpu.CompilerParams(
            dimension_semantics=("parallel",),   # megacore-shard batch on v7x
            vmem_limit_bytes=vmem_limit,
        ),
    )(xp, w1p, b1p, w2p, b2p)

    return out_padded[:B, :o_dim]


def init_params(key, i_dim, h_dim, o_dim, dtype=jnp.float32):
    """Deterministic init mimicking PyTorch's default Linear init
    (uniform in +/- 1/sqrt(fan_in))."""
    k1, k2, k3, k4 = jax.random.split(key, 4)
    lim1 = 1.0 / (i_dim ** 0.5)
    lim2 = 1.0 / (h_dim ** 0.5)
    w1 = jax.random.uniform(k1, (i_dim, h_dim), dtype, minval=-lim1, maxval=lim1)
    b1 = jax.random.uniform(k2, (h_dim,), dtype, minval=-lim1, maxval=lim1)
    w2 = jax.random.uniform(k3, (h_dim, o_dim), dtype, minval=-lim2, maxval=lim2)
    b2 = jax.random.uniform(k4, (o_dim,), dtype, minval=-lim2, maxval=lim2)
    return w1, b1, w2, b2


def mlp_reference(x, w1, b1, w2, b2):
    h = x @ w1 + b1
    h = jnp.where(h > 0, h, LEAKY_SLOPE * h)
    return h @ w2 + b2


if __name__ == "__main__":
    key = jax.random.PRNGKey(0)
    kx, kp = jax.random.split(key)

    # Small shapes consistent with the module's (b, i_dim) -> (b, o_dim) forward.
    # batch=200 is deliberately not tile-aligned so padding + a 2-step grid
    # (TILE_B=128) are exercised.
    batch, i_dim, h_dim, o_dim = 200, 32, 64, 16
    x = jax.random.normal(kx, (batch, i_dim), dtype=jnp.float32)
    w1, b1, w2, b2 = init_params(kp, i_dim, h_dim, o_dim)

    out = mlp_forward(x, w1, b1, w2, b2)
    out = jax.block_until_ready(out)

    ref = mlp_reference(x, w1, b1, w2, b2)
    assert out.shape == (batch, o_dim)
    # bf16 matmuls with f32 accumulation vs. pure-f32 reference: loose tolerance.
    assert jnp.allclose(out, ref, atol=2e-2, rtol=2e-2), "mismatch vs. pure-JAX reference"

    print("KERNEL_OK")
</pallas_src>

<mosaic_0001>
module attributes {stable_mosaic.version = 11 : i64} {
  func.func @mlp_kernel(%arg0: i32, %arg1: memref<128x128xbf16, #tpu.memory_space<vmem>>, %arg2: memref<128x128xbf16, #tpu.memory_space<vmem>>, %arg3: memref<1x128xf32, #tpu.memory_space<vmem>>, %arg4: memref<128x128xbf16, #tpu.memory_space<vmem>>, %arg5: memref<1x128xf32, #tpu.memory_space<vmem>>, %arg6: memref<128x128xf32, #tpu.memory_space<vmem>>) attributes {dimension_semantics = [#tpu.dimension_semantics<parallel>], iteration_bounds = array<i64: 2>, scalar_prefetch = 0 : i64, scratch_operands = 0 : i64, tpu.core_type = #tpu.core_type<tc>, window_params = [{transform_indices = @transform_0, window_bounds = array<i64: 128, 128>}, {pipeline_mode = #tpu.pipeline_mode<synchronous>, transform_indices = @transform_1, window_bounds = array<i64: 128, 128>}, {pipeline_mode = #tpu.pipeline_mode<synchronous>, transform_indices = @transform_2, window_bounds = array<i64: 1, 128>}, {pipeline_mode = #tpu.pipeline_mode<synchronous>, transform_indices = @transform_3, window_bounds = array<i64: 128, 128>}, {pipeline_mode = #tpu.pipeline_mode<synchronous>, transform_indices = @transform_4, window_bounds = array<i64: 1, 128>}, {transform_indices = @transform_5, window_bounds = array<i64: 128, 128>}]} {
    %c0 = arith.constant 0 : index
    %c0_0 = arith.constant 0 : index
    %0 = vector.load %arg1[%c0, %c0_0] : memref<128x128xbf16, #tpu.memory_space<vmem>>, vector<128x128xbf16>
    %c0_1 = arith.constant 0 : index
    %c0_2 = arith.constant 0 : index
    %1 = vector.load %arg2[%c0_1, %c0_2] : memref<128x128xbf16, #tpu.memory_space<vmem>>, vector<128x128xbf16>
    %cst = arith.constant dense<0.000000e+00> : vector<128x128xf32>
    %2 = tpu.matmul %0, %1, %cst {dimension_numbers = #tpu.dot_dimension_numbers<[1], [0], [0], [1], [0, 0, 1, 1], [], []>} : vector<128x128xbf16>, vector<128x128xbf16>, vector<128x128xf32> -> vector<128x128xf32>
    %c0_3 = arith.constant 0 : index
    %c0_4 = arith.constant 0 : index
    %3 = vector.load %arg3[%c0_3, %c0_4] : memref<1x128xf32, #tpu.memory_space<vmem>>, vector<1x128xf32>
    %4 = vector.broadcast %3 : vector<1x128xf32> to vector<128x128xf32>
    %5 = arith.addf %2, %4 : vector<128x128xf32>
    %cst_5 = arith.constant 0.000000e+00 : f32
    %6 = vector.broadcast %cst_5 : f32 to vector<128x128xf32>
    %7 = arith.cmpf ogt, %5, %6 : vector<128x128xf32>
    %cst_6 = arith.constant 0.00999999977 : f32
    %8 = vector.broadcast %cst_6 : f32 to vector<128x128xf32>
    %9 = arith.mulf %8, %5 : vector<128x128xf32>
    %10 = arith.select %7, %5, %9 : vector<128x128xi1>, vector<128x128xf32>
    %11 = arith.truncf %10 : vector<128x128xf32> to vector<128x128xbf16>
    %c0_7 = arith.constant 0 : index
    %c0_8 = arith.constant 0 : index
    %12 = vector.load %arg4[%c0_7, %c0_8] : memref<128x128xbf16, #tpu.memory_space<vmem>>, vector<128x128xbf16>
    %cst_9 = arith.constant dense<0.000000e+00> : vector<128x128xf32>
    %13 = tpu.matmul %11, %12, %cst_9 {dimension_numbers = #tpu.dot_dimension_numbers<[1], [0], [0], [1], [0, 0, 1, 1], [], []>} : vector<128x128xbf16>, vector<128x128xbf16>, vector<128x128xf32> -> vector<128x128xf32>
    %c0_10 = arith.constant 0 : index
    %c0_11 = arith.constant 0 : index
    %14 = vector.load %arg5[%c0_10, %c0_11] : memref<1x128xf32, #tpu.memory_space<vmem>>, vector<1x128xf32>
    %15 = vector.broadcast %14 : vector<1x128xf32> to vector<128x128xf32>
    %16 = arith.addf %13, %15 : vector<128x128xf32>
    %c0_12 = arith.constant 0 : index
    %c0_13 = arith.constant 0 : index
    %17 = vector.load %arg6[%c0_12, %c0_13] : memref<128x128xf32, #tpu.memory_space<vmem>>, vector<128x128xf32>
    tpu.vector_store %arg6[%c0_12, %c0_13], %16 {strides = array<i32>} : memref<128x128xf32, #tpu.memory_space<vmem>>, vector<128x128xf32>,
    return
  }
  func.func @transform_0(%arg0: i32) -> (i32, i32) {
    %c0_i32 = arith.constant 0 : i32
    %c0_i32_0 = arith.constant 0 : i32
    return %arg0, %c0_i32 : i32, i32
  }
  func.func @transform_1(%arg0: i32) -> (i32, i32) {
    %c0_i32 = arith.constant 0 : i32
    %c0_i32_0 = arith.constant 0 : i32
    %c0_i32_1 = arith.constant 0 : i32
    return %c0_i32, %c0_i32_0 : i32, i32
  }
  func.func @transform_2(%arg0: i32) -> (i32, i32) {
    %c0_i32 = arith.constant 0 : i32
    %c0_i32_0 = arith.constant 0 : i32
    %c0_i32_1 = arith.constant 0 : i32
    return %c0_i32, %c0_i32_0 : i32, i32
  }
  func.func @transform_3(%arg0: i32) -> (i32, i32) {
    %c0_i32 = arith.constant 0 : i32
    %c0_i32_0 = arith.constant 0 : i32
    %c0_i32_1 = arith.constant 0 : i32
    return %c0_i32, %c0_i32_0 : i32, i32
  }
  func.func @transform_4(%arg0: i32) -> (i32, i32) {
    %c0_i32 = arith.constant 0 : i32
    %c0_i32_0 = arith.constant 0 : i32
    %c0_i32_1 = arith.constant 0 : i32
    return %c0_i32, %c0_i32_0 : i32, i32
  }
  func.func @transform_5(%arg0: i32) -> (i32, i32) {
    %c0_i32 = arith.constant 0 : i32
    %c0_i32_0 = arith.constant 0 : i32
    return %arg0, %c0_i32 : i32, i32
  }
}

</mosaic_0001>

<bundles_post_ra>
// kernel: tpu_custom_call.1
= control target key start
LH: loop header
LB: loop body
LE: loop exit
PB: predicated region body
PF: predicated region fallthrough
CT: control target
= control target key end

     0   :  { %10 = vsyncpa [#allocation3], 0  ;;  %s1583_s0 = inlined_call_operand.hbm [shape: bf16[256,128], index: 0, kind: input, shape index: {}]   ;;  %s1584_s1 = inlined_call_operand.hbm [shape: bf16[128,128], index: 1, kind: input, shape index: {}]   ;;  %s1585_s2 = inlined_call_operand.vmem [shape: f32[1,128], index: 2, kind: input, shape index: {}]   ;;  %s1586_s3 = inlined_call_operand.hbm [shape: bf16[128,128], index: 3, kind: input, shape index: {}]   ;;  %s1587_s4 = inlined_call_operand.vmem [shape: f32[1,128], index: 4, kind: input, shape index: {}]   ;;  %s1588_s5 = inlined_call_operand.hbm [shape: f32[256,128], index: 5, kind: output, shape index: {}]  }
   0x1   :  { %12 = vsyncpa [#allocation3 + $0x1], 0 }
   0x2   :  { %13 = vsyncpa [#allocation6], 0 }
   0x3   :  { %14 = vsyncpa [#allocation4], 0 }
   0x4   :  { %16 = vsyncpa [#allocation4 + $0x1], 0  ;;  %s1286_s18 = smov 0   ;;  %s1288_s19 = smov 0  }
   0x5   :  { %s1290_s20 = smov 0   ;;  %s1292_s21 = smov 0  }
   0x6 LB: > { %s1307_s22 = sadd.s32 4294967295, %s1246_s21   ;;  %s853_s23 = sadd.s32 4294967294, %s1246_s21   ;;  %s1246_s21 = sphi %s1292_s21, %s1608_s21   ;;  %s1242_s20 = sphi %s1290_s20, %s1607_s20   ;;  %s1238_s19 = sphi %s1288_s19, %s1606_s19   ;;  %s1234_s18 = sphi %s1286_s18, %s1605_s18  }
   0x7   : > { %p42_p0 = scmp.ne.s32.totalorder %s1238_s19, %s1234_s18  ;;  %p1589_p1 = scmp.eq.s32.totalorder %s1307_s22, 0 }
   0x8   : > { %p156_p3 = scmp.eq.s32.totalorder %s853_s23, 1  ;;  %p854_p5 = scmp.ge.s32.totalorder %s1246_s21, 1 }
   0x9   : > { %p1316_p4 = por %p1589_p1, %p42_p0  ;;  %p163_p7 = scmp.lt.s32.totalorder %s1246_s21, 3 }
   0xa   : > { %p1321_p6 = por %p156_p3, %p42_p0  ;;  %s1248_s27 = smov [#allocation5]  }
   0xb   : > { %s1592_s24 = scalar_select %p1316_p4, 1, 0 }
   0xc   : > { %s1593_s25 = scalar_select %p1321_p6, 1, 0 }
   0xd   : > { %p1326_p8 = pnand %p854_p5, %p163_p7  ;;  %s175_s28 = sshll.u32 %s1248_s27, 4  ;;  %s1330_s28 = int_to_ptr.vmem [resolvable:$true] %s175_s28 }
   0xe   : > { %s1249_s30 = smov [#allocation7]   ;;  %s1090_s9 = scalar_lea.hbm %s1584_s1, 1024 }
   0xf   : > { %p1007_p9 = pneg %p1326_p8  ;;  %s191_s6 = sshll.u32 %s1249_s30, 4  ;;  %s1341_s6 = int_to_ptr.vmem [resolvable:$true] %s191_s6 }
  0x10   : > { %p1091_p12 = scmp.ne.s32.totalorder %s1584_s1, %s1090_s9  ;;  %p1097_p5 = scmp.lt.u32.totalorder %s1090_s9, %s1584_s1 }
  0x11   : > { %p1337_p11 = pnand %p1007_p9, %p1589_p1 }
  0x13   : > { %p1092_p13 = pneg %p1337_p11 }
  0x15   : > { %p1093_p0 = pnand %p1092_p13, %p1091_p12 }
  0x17   : > { %p1094_p3 = pneg %p1093_p0 }
  0x19   : > { %p1099_p7 = pnand %p1097_p5, %p1094_p3 }
  0x1b   : > { %1102 = shalt.err (!%p1099_p7)
}
  0x1c   : > { %s1103_s14 = scalar_lea.vmem %s1330_s28, 1024  ;;  %p1111_p2 = scmp.lt.s32.totalorder %s1330_s28, %s1330_s28 }
  0x1d   : > { %p1104_p9 = scmp.ne.s32.totalorder %s1330_s28, %s1103_s14  ;;  %p1112_p12 = scmp.lt.s32.totalorder %s1103_s14, %s1103_s14 }
  0x1f   : > { %p1106_p10 = pnand %p1104_p9, %p1092_p13  ;;  %p1113_p0 = por %p1112_p12, %p1111_p2 }
  0x21   : > { %p1107_p1 = pneg %p1106_p10 }
  0x23   : > { %p1114_p6 = pnand %p1113_p0, %p1107_p1 }
  0x25   : > { %1117 = shalt.err (!%p1114_p6)
}
  0x26   : > { %s1250_s15 = smov 64   ;;  %s1251_s16 = smov 4  }
  0x27   : > { %1010 = dma.hbm_to_vmem [thread:$0]  (!%p1337_p11), %s1584_s1, 1024, %s1330_s28, [#allocation6], %s1250_s15, %s1250_s15, %s1251_s16  }
  0x28   : > { %s1118_s7 = scalar_lea.hbm %s1586_s3, 1024 }
  0x29   : > { %p1119_p1 = scmp.ne.s32.totalorder %s1586_s3, %s1118_s7  ;;  %p1125_p10 = scmp.lt.u32.totalorder %s1118_s7, %s1586_s3 }
  0x2b   : > { %p1121_p2 = pnand %p1119_p1, %p1092_p13 }
  0x2d   : > { %p1122_p6 = pneg %p1121_p2 }
  0x2f   : > { %p1127_p3 = pnand %p1125_p10, %p1122_p6 }
  0x31   : > { %1130 = shalt.err (!%p1127_p3)
}
  0x32   : > { %s1131_s28 = scalar_lea.vmem %s1341_s6, 1024  ;;  %p1139_p12 = scmp.lt.s32.totalorder %s1341_s6, %s1341_s6 }
  0x33   : > { %p1132_p5 = scmp.ne.s32.totalorder %s1341_s6, %s1131_s28  ;;  %p1140_p0 = scmp.lt.s32.totalorder %s1131_s28, %s1131_s28 }
  0x35   : > { %p1134_p7 = pnand %p1132_p5, %p1092_p13  ;;  %p1141_p1 = por %p1140_p0, %p1139_p12 }
  0x37   : > { %p1135_p9 = pneg %p1134_p7 }
  0x39   : > { %p1142_p2 = pnand %p1141_p1, %p1135_p9 }
  0x3b   : > { %1145 = shalt.err (!%p1142_p2)
}
  0x3c   : > { %1013 = dma.hbm_to_vmem [thread:$0]  (!%p1337_p11), %s1586_s3, 1024, %s1341_s6, [#allocation6], %s1250_s15, %s1250_s15, %s1251_s16  }
  0x3d   : > { %s1402_s29 = sadd.s32 1, %s1246_s21   ;;  %s29_s14 = sadd.s32 1, %s1242_s20 }
  0x3e   : > { %s26_s17 = ssub.s32 %s1246_s21, %s1402_s29  ;;  %p36_p13 = scmp.ne.s32.totalorder %s1242_s20, %s1238_s19 }
  0x3f   : > { %p27_p6 = scmp.eq.s32.totalorder %s26_s17, 0  ;;  %p37_p10 = scmp.eq.s32.totalorder %s1246_s21, 0 }
  0x40   : > { %p1596_p3 = scmp.eq.s32.totalorder %s1307_s22, 1  ;;  %p1024_p7 = scmp.lt.s32.totalorder %s1246_s21, 2 }
  0x41   : > { %s1418_s27 = scalar_select %p27_p6, %s1242_s20, %s29_s14  }
  0x42   : > { %p1412_p5 = por %p1596_p3, %p36_p13  ;;  %p38_p9 = por %p37_p10, %p36_p13 }
  0x43   : > { %s208_s30 = sand.u32 1, %s1242_s20   ;;  %s897_s6 = sshll.u32 %s1246_s21, 10 }
  0x44   : > { %s1597_s23 = scalar_select %p1412_p5, 1, 0 }
  0x45   : > { %s858_s7 = sshll.u32 %s208_s30, 6  ;;  %s1425_s10 = scalar_lea.hbm %s1583_s0, %s897_s6 }
  0x46   : > { %s212_s11 = scalar_lea.vmem [#allocation2], %s858_s7  ;;  %p1429_p11 = pnand %p1024_p7, %p38_p9 }
  0x47   : > { %s219_s28 = sshll.u32 %s212_s11, 4  ;;  %s1433_s13 = scalar_lea.sflag [#allocation3], %s208_s30  ;;  %s1427_s28 = int_to_ptr.vmem [resolvable:$true] %s219_s28 }
  0x48   : > { %s1146_s14 = scalar_lea.hbm %s1425_s10, 1024  ;;  %p1148_p0 = pneg %p1429_p11 }
  0x49   : > { %p1147_p12 = scmp.ne.s32.totalorder %s1425_s10, %s1146_s14  ;;  %s1151_s6 = scalar_lea.hbm %s1583_s0, 2048 }
  0x4a   : > { %p1152_p13 = scmp.lt.u32.totalorder %s1425_s10, %s1583_s0  ;;  %p1153_p6 = scmp.lt.u32.totalorder %s1151_s6, %s1146_s14 }
  0x4b   : > { %p1149_p1 = pnand %p1148_p0, %p1147_p12  ;;  %p1155_p3 = scmp.lt.u32.totalorder %s1146_s14, %s1425_s10 }
  0x4c   : > { %p1154_p10 = por %p1153_p6, %p1152_p13 }
  0x4d   : > { %p1150_p2 = pneg %p1149_p1 }
  0x4e   : > { %p1156_p7 = por %p1155_p3, %p1154_p10 }
  0x50   : > { %p1157_p9 = pnand %p1156_p7, %p1150_p2 }
  0x52   : > { %1160 = shalt.err (!%p1157_p9)
}
  0x53   : > { %s1161_s30 = scalar_lea.vmem %s1427_s28, 1024  ;;  %s1252_s11 = smov [#allocation2]  }
  0x54   : > { %p1162_p12 = scmp.ne.s32.totalorder %s1427_s28, %s1161_s30  ;;  %s1166_s17 = sshll.u32 %s1252_s11, 4  ;;  %s1167_s17 = int_to_ptr.vmem [resolvable:$false] %s1166_s17 }
  0x55   : > { %s1168_s7 = scalar_lea.vmem %s1167_s17, 2048  ;;  %p1169_p4 = scmp.lt.s32.totalorder %s1427_s28, %s1167_s17 }
  0x56   : > { %p1164_p1 = pnand %p1162_p12, %p1148_p0  ;;  %p1170_p13 = scmp.lt.s32.totalorder %s1168_s7, %s1161_s30 }
  0x58   : > { %p1165_p5 = pneg %p1164_p1  ;;  %p1171_p6 = por %p1170_p13, %p1169_p4 }
  0x5a   : > { %p1172_p10 = pnand %p1171_p6, %p1165_p5 }
  0x5c   : > { %1175 = shalt.err (!%p1172_p10)
}
  0x5d   : > { %1017 = dma.hbm_to_vmem [thread:$0]  (!%p1429_p11), %s1425_s10, 1024, %s1427_s28, %s1433_s13, %s1250_s15, %s1250_s15, %s1251_s16  }
  0x5e   : > { %231 = sbr.rel (%p1326_p8) target bundleno = 617 (0x269), region = 40  ;;  %s1467_s14 = sand.u32 (!%p1326_p8), 1, %s1238_s19  }
  0x5f   : > { %s862_s6 = sshll.u32 (!%p1326_p8), %s1467_s14, 6  ;;  %s234_s8 = scalar_lea.sflag (!%p1326_p8), [#allocation3], %s1467_s14 }
  0x60   : > { %s1471_s9 = scalar_lea.vmem (!%p1326_p8), [#allocation2], %s862_s6  ;;  %p1599_p4 = scmp.ne.s32.totalorder (!%p1326_p8), %s1592_s24, 0 }
  0x65   : > { %1221 = dma.done.wait (%p1599_p4), %s234_s8, 1024  }
  0x66   : > { %1223 = vsyncadd (%p1599_p4), %s234_s8, 4294966272  ;;  %p1600_p5 = scmp.eq.s32.totalorder %s1307_s22, 0 }
  0x68   : > { %1225 = dma.done.wait (%p1600_p5), [#allocation6], 2048   ;;  %p1601_p8 = pmov %p1600_p5 }
  0x69   : > { %v1066_v0 = vld [vmem:[#allocation5] sm:$0xff]   ;;  %v1067_v1 = vld [vmem:[#allocation5 + $0x8] sm:$0xff]   ;;  %v1068_v2 = vld [vmem:[#allocation5 + $0x10] sm:$0xff]   ;;  %s865_s15 = sshll.u32 %s1467_s14, 7  ;;  %s898_s12 = sshll.u32 %s1307_s22, 11 }
  0x6a   : > { %1227 = vsyncadd (%p1601_p8), [#allocation6], 4294965248  ;;  %931 = vmatprep.subr.bf16.mxu0 %v1066_v0  ;;  %v1069_v3 = vld [vmem:[#allocation5 + $0x18] sm:$0xff]   ;;  %v1074_v4 = vld [vmem:[%s1471_s9] sm:$0xff]   ;;  %s1514_s28 = scalar_lea.vmem [#allocation8], %s865_s15  ;;  %s1534_s17 = scalar_lea.hbm %s1588_s5, %s898_s12 }
  0x6b   : > { %932 = vmatpush3.bf16.msra.mxu0 %v1066_v0  ;;  %947 = vmatprep.mubr.bf16.mxu0 %v1074_v4  ;;  %v1070_v5 = vld [vmem:[#allocation5 + $0x20] sm:$0xff]   ;;  %v1071_v6 = vld [vmem:[#allocation5 + $0x28] sm:$0xff]   ;;  %v1072_v9 = vld [vmem:[#allocation5 + $0x30] sm:$0xff]   ;;  %s761_s13 = sshll.u32 %s1514_s28, 4  ;;  %s748_s22 = scalar_lea.sflag [#allocation4], %s1467_s14  ;;  %s1536_s13 = int_to_ptr.vmem [resolvable:$true] %s761_s13 }
  0x6c   : > { %933 = vmatprep.subr.bf16.mxu0 %v1067_v1  ;;  %v1082_v7 = vld [vmem:[#allocation7] sm:$0xff]   ;;  %v1083_v8 = vld [vmem:[#allocation7 + $0x8] sm:$0xff]   ;;  %v1084_v10 = vld [vmem:[#allocation7 + $0x10] sm:$0xff]   ;;  %s1176_s7 = scalar_lea.vmem %s1536_s13, 2048  ;;  %p1602_p0 = scmp.ne.s32.totalorder %s1597_s23, 0 }
  0x6d   : > { %963 = vmatprep.subr.bf16.mxu1 %v1082_v7  ;;  %v1073_v11 = vld [vmem:[#allocation5 + $0x38] sm:$0xff]   ;;  %v1086_v13 = vld [vmem:[#allocation7 + $0x20] sm:$0xff]   ;;  %v1075_v14 = vld [vmem:[%s1471_s9 + $0x8] sm:$0xff]   ;;  %p1177_p11 = scmp.ne.s32.totalorder %s1536_s13, %s1176_s7  ;;  %s1253_s6 = smov [#allocation8]  }
  0x6e   : > { %964 = vmatpush3.bf16.msra.mxu1 %v1082_v7  ;;  %v1085_v12 = vld [vmem:[#allocation7 + $0x18] sm:$0xff]   ;;  %v1076_v15 = vld [vmem:[%s1471_s9 + $0x10] sm:$0xff]   ;;  %v1078_v17 = vld [vmem:[%s1471_s9 + $0x20] sm:$0xff]   ;;  %s1180_s8 = sshll.u32 %s1253_s6, 4  ;;  %s1181_s8 = int_to_ptr.vmem [resolvable:$false] %s1180_s8 }
  0x6f   : > { %934 = vmatpush3.bf16.msra.mxu0 %v1067_v1  ;;  %965 = vmatprep.subr.bf16.mxu1 %v1083_v8  ;;  %v1077_v16 = vld [vmem:[%s1471_s9 + $0x18] sm:$0xff]   ;;  %v1079_v18 = vld [vmem:[%s1471_s9 + $0x28] sm:$0xff]   ;;  %v1080_v19 = vld [vmem:[%s1471_s9 + $0x30] sm:$0xff]   ;;  %p1178_p2 = pnand %p1177_p11, %p1602_p0  ;;  %p1183_p7 = scmp.lt.s32.totalorder %s1536_s13, %s1181_s8 }
  0x70   : > { %935 = vmatprep.subr.bf16.mxu0 %v1068_v2  ;;  %v1081_v20 = vld [vmem:[%s1471_s9 + $0x38] sm:$0xff]   ;;  %v1087_v21 = vld [vmem:[#allocation7 + $0x28] sm:$0xff]   ;;  %v1088_v22 = vld [vmem:[#allocation7 + $0x30] sm:$0xff]   ;;  %s1182_s9 = scalar_lea.vmem %s1181_s8, 4096 }
  0x71   : > { %v1089_v23 = vld [vmem:[#allocation7 + $0x38] sm:$0xff]   ;;  %v1492_v24 = vld [vmem:[%s1585_s2] ss:$0 sm:$0xff]  ;;  %p1179_p3 = pneg %p1178_p2  ;;  %p1184_p9 = scmp.lt.s32.totalorder %s1182_s9, %s1176_s7 }
  0x72   : > { %966 = vmatpush3.bf16.msra.mxu1 %v1083_v8 }
  0x73   : > { %936 = vmatpush3.bf16.msra.mxu0 %v1068_v2  ;;  %967 = vmatprep.subr.bf16.mxu1 %v1084_v10  ;;  %p1185_p12 = por %p1184_p9, %p1183_p7 }
  0x74   : > { %937 = vmatprep.subr.bf16.mxu0 %v1069_v3 }
  0x75   : > { %p1186_p1 = pnand %p1185_p12, %p1179_p3 }
  0x76   : > { %968 = vmatpush3.bf16.msra.mxu1 %v1084_v10 }
  0x77   : > { %938 = vmatpush3.bf16.msra.mxu0 %v1069_v3  ;;  %969 = vmatprep.subr.bf16.mxu1 %v1085_v12 }
  0x78   : > { %939 = vmatprep.subr.bf16.mxu0 %v1070_v5 }
  0x7a   : > { %970 = vmatpush3.bf16.msra.mxu1 %v1085_v12 }
  0x7b   : > { %940 = vmatpush3.bf16.msra.mxu0 %v1070_v5  ;;  %971 = vmatprep.subr.bf16.mxu1 %v1086_v13 }
  0x7c   : > { %941 = vmatprep.subr.bf16.mxu0 %v1071_v6 }
  0x7e   : > { %972 = vmatpush3.bf16.msra.mxu1 %v1086_v13 }
  0x7f   : > { %942 = vmatpush3.bf16.msra.mxu0 %v1071_v6  ;;  %973 = vmatprep.subr.bf16.mxu1 %v1087_v21 }
  0x80   : > { %943 = vmatprep.subr.bf16.mxu0 %v1072_v9 }
  0x82   : > { %974 = vmatpush3.bf16.msra.mxu1 %v1087_v21 }
  0x83   : > { %944 = vmatpush3.bf16.msra.mxu0 %v1072_v9  ;;  %975 = vmatprep.subr.bf16.mxu1 %v1088_v22 }
  0x84   : > { %945 = vmatprep.subr.bf16.mxu0 %v1073_v11 }
  0x86   : > { %976 = vmatpush3.bf16.msra.mxu1 %v1088_v22 }
  0x87   : > { %946 = vmatpush3.bf16.msra.mxu0 %v1073_v11  ;;  %977 = vmatprep.subr.bf16.mxu1 %v1089_v23 }
  0x8a   : > { %948 = vmatmul.mubr.bf16.vlgmr.msra.gmra.mrb[0].mxu0 %v1075_v14  ;;  %978 = vmatpush3.bf16.msra.mxu1 %v1089_v23 }
  0x8b   : > { %951 = vmatprep.mubr.bf16.mxu0 %v1076_v15 }
  0x92   : > { %952 = vmatmul.mubr.bf16.gmra.mrb[4].mxu0 %v1077_v16 }
  0x93   : > { %955 = vmatprep.mubr.bf16.mxu0 %v1078_v17 }
  0x9a   : > { %956 = vmatmul.mubr.bf16.gmra.mrb[8].mxu0 %v1079_v18 }
  0x9b   : > { %959 = vmatprep.mubr.bf16.mxu0 %v1080_v19 }
  0xa2   : > { %960 = vmatmul.mubr.bf16.gmra.mrb[12].mxu0 %v1081_v20 }
 0x15d   : > { %v949_v25 = vpop.f32.mrb[0].mxu0 }
 0x15e   : > { %v453_v26 = vadd.f32 %v949_v25, %v1492_v24  ;;  %v444_v27 = vpop.f32.mrb[1].mxu0 }
 0x15f   : > { %v445_v28 = vadd.f32 %v1492_v24, %v444_v27  ;;  %v950_v29 = vpop.f32.mrb[2].mxu0 }
 0x160   : > { %v525_v30 = vmul.f32 0.01, %v453_v26  ;;  %v456_v31 = vadd.f32 %v950_v29, %v1492_v24  ;;  %v447_v32 = vpop.f32.mrb[3].mxu0  ;;  %vm509_vm0 = vcmp.gt.f32.partialorder %v453_v26, 0.0 }
 0x161   : > { %v523_v33 = vmul.f32 0.01, %v445_v28  ;;  %v448_v34 = vadd.f32 %v1492_v24, %v447_v32  ;;  %vm507_vm2 = vcmp.gt.f32.partialorder %v445_v28, 0.0 }
 0x162   : > { %vm510_vm1 = vcmp.gt.f32.partialorder %v456_v31, 0.0  ;;  %v526_v35 = vmul.f32 0.01, %v456_v31  ;;  %v541_v37 = vsel %vm509_vm0, %v453_v26, %v525_v30 }
 0x163   : > { %v524_v36 = vmul.f32 0.01, %v448_v34  ;;  %vm508_vm3 = vcmp.gt.f32.partialorder %v448_v34, 0.0  ;;  %v539_v40 = vsel %vm507_vm2, %v445_v28, %v523_v33 }
 0x164   : > { %v542_v38 = vsel %vm510_vm1, %v456_v31, %v526_v35 }
 0x165   : > { %v953_v39 = vpop.f32.mrb[4].mxu0  ;;  %v540_v41 = vsel %vm508_vm3, %v448_v34, %v524_v36  ;;  %v556_v42 = vpack.c.bf16 %v542_v38, %v541_v37  ;;  %v883_v34 = vld [vmem:[%s1587_s4] ss:$0 sm:$0xff] }
 0x166   : > { %v469_v43 = vadd.f32 %v953_v39, %v1492_v24  ;;  %v460_v44 = vpop.f32.mrb[5].mxu0  ;;  %v555_v45 = vpack.c.bf16 %v540_v41, %v539_v40 }
 0x167   : > { %v461_v46 = vadd.f32 %v1492_v24, %v460_v44  ;;  %v954_v47 = vpop.f32.mrb[6].mxu0 }
 0x168   : > { %v529_v48 = vmul.f32 0.01, %v469_v43  ;;  %v472_v49 = vadd.f32 %v954_v47, %v1492_v24  ;;  %v463_v50 = vpop.f32.mrb[7].mxu0  ;;  %979 = vmatprep.mubr.bf16.mxu1 %v555_v45  ;;  %vm513_vm4 = vcmp.gt.f32.partialorder %v469_v43, 0.0 }
 0x169   : > { %v527_v51 = vmul.f32 0.01, %v461_v46  ;;  %v464_v52 = vadd.f32 %v1492_v24, %v463_v50  ;;  %980 = vmatmul.mubr.bf16.vlgmr.msra.gmra.mrb[0].mxu1 %v556_v42  ;;  %vm511_vm5 = vcmp.gt.f32.partialorder %v461_v46, 0.0 }
 0x16a   : > { %vm514_vm6 = vcmp.gt.f32.partialorder %v472_v49, 0.0  ;;  %v530_v53 = vmul.f32 0.01, %v472_v49  ;;  %v545_v55 = vsel %vm513_vm4, %v469_v43, %v529_v48 }
 0x16b   : > { %vm512_vm7 = vcmp.gt.f32.partialorder %v464_v52, 0.0  ;;  %v528_v54 = vmul.f32 0.01, %v464_v52  ;;  %v543_v58 = vsel %vm511_vm5, %v461_v46, %v527_v51 }
 0x16c   : > { %v546_v56 = vsel %vm514_vm6, %v472_v49, %v530_v53 }
 0x16d   : > { %v957_v57 = vpop.f32.mrb[8].mxu0  ;;  %v544_v59 = vsel %vm512_vm7, %v464_v52, %v528_v54  ;;  %v558_v60 = vpack.c.bf16 %v546_v56, %v545_v55 }
 0x16e   : > { %v485_v61 = vadd.f32 %v957_v57, %v1492_v24  ;;  %v476_v62 = vpop.f32.mrb[9].mxu0  ;;  %v557_v63 = vpack.c.bf16 %v544_v59, %v543_v58 }
 0x16f   : > { %v477_v0 = vadd.f32 %v1492_v24, %v476_v62  ;;  %v958_v1 = vpop.f32.mrb[10].mxu0 }
 0x170   : > { %v533_v2 = vmul.f32 0.01, %v485_v61  ;;  %v488_v3 = vadd.f32 %v958_v1, %v1492_v24  ;;  %v479_v4 = vpop.f32.mrb[11].mxu0  ;;  %983 = vmatprep.mubr.bf16.mxu1 %v557_v63  ;;  %vm517_vm8 = vcmp.gt.f32.partialorder %v485_v61, 0.0 }
 0x171   : > { %v531_v5 = vmul.f32 0.01, %v477_v0  ;;  %v480_v6 = vadd.f32 %v1492_v24, %v479_v4  ;;  %984 = vmatmul.mubr.bf16.gmra.mrb[4].mxu1 %v558_v60  ;;  %vm515_vm9 = vcmp.gt.f32.partialorder %v477_v0, 0.0 }
 0x172   : > { %vm518_vm10 = vcmp.gt.f32.partialorder %v488_v3, 0.0  ;;  %v534_v7 = vmul.f32 0.01, %v488_v3  ;;  %v549_v9 = vsel %vm517_vm8, %v485_v61, %v533_v2 }
 0x173   : > { %vm516_vm11 = vcmp.gt.f32.partialorder %v480_v6, 0.0  ;;  %v532_v8 = vmul.f32 0.01, %v480_v6  ;;  %v547_v12 = vsel %vm515_vm9, %v477_v0, %v531_v5 }
 0x174   : > { %v550_v10 = vsel %vm518_vm10, %v488_v3, %v534_v7 }
 0x175   : > { %v961_v11 = vpop.f32.mrb[12].mxu0  ;;  %v548_v13 = vsel %vm516_vm11, %v480_v6, %v532_v8  ;;  %v560_v14 = vpack.c.bf16 %v550_v10, %v549_v9 }
 0x176   : > { %v501_v15 = vadd.f32 %v961_v11, %v1492_v24  ;;  %v492_v16 = vpop.f32.mrb[13].mxu0  ;;  %v559_v17 = vpack.c.bf16 %v548_v13, %v547_v12 }
 0x177   : > { %v493_v18 = vadd.f32 %v1492_v24, %v492_v16  ;;  %v962_v19 = vpop.f32.mrb[14].mxu0 }
 0x178   : > { %v537_v20 = vmul.f32 0.01, %v501_v15  ;;  %v504_v21 = vadd.f32 %v962_v19, %v1492_v24  ;;  %v495_v22 = vpop.f32.mrb[15].mxu0  ;;  %987 = vmatprep.mubr.bf16.mxu1 %v559_v17  ;;  %vm521_vm12 = vcmp.gt.f32.partialorder %v501_v15, 0.0 }
 0x179   : > { %v535_v23 = vmul.f32 0.01, %v493_v18  ;;  %v496_v25 = vadd.f32 %v1492_v24, %v495_v22  ;;  %988 = vmatmul.mubr.bf16.gmra.mrb[8].mxu1 %v560_v14  ;;  %vm519_vm13 = vcmp.gt.f32.partialorder %v493_v18, 0.0 }
 0x17a   : > { %vm522_vm14 = vcmp.gt.f32.partialorder %v504_v21, 0.0  ;;  %v538_v26 = vmul.f32 0.01, %v504_v21  ;;  %v553_v28 = vsel %vm521_vm12, %v501_v15, %v537_v20 }
 0x17b   : > { %vm520_vm15 = vcmp.gt.f32.partialorder %v496_v25, 0.0  ;;  %v536_v27 = vmul.f32 0.01, %v496_v25  ;;  %v551_v30 = vsel %vm519_vm13, %v493_v18, %v535_v23 }
 0x17c   : > { %v554_v29 = vsel %vm522_vm14, %v504_v21, %v538_v26 }
 0x17d   : > { %v552_v31 = vsel %vm520_vm15, %v496_v25, %v536_v27  ;;  %v562_v32 = vpack.c.bf16 %v554_v29, %v553_v28 }
 0x17e   : > { %v561_v33 = vpack.c.bf16 %v552_v31, %v551_v30 }
 0x180   : > { %991 = vmatprep.mubr.bf16.mxu1 %v561_v33 }
 0x181   : > { %992 = vmatmul.mubr.bf16.gmra.mrb[12].mxu1 %v562_v32 }
 0x23c   : > { %v981_v24 = vpop.f32.mrb[0].mxu1 }
 0x23d   : > { %v677_v35 = vadd.f32 %v981_v24, %v883_v34  ;;  %v668_v36 = vpop.f32.mrb[1].mxu1 }
 0x23e   : > { %v669_v37 = vadd.f32 %v883_v34, %v668_v36  ;;  %v982_v38 = vpop.f32.mrb[2].mxu1 }
 0x23f   : > { %733 = vst [vmem:[%s1514_s28 + $0x10] sm:$0xff] %v677_v35  ;;  %v680_v39 = vadd.f32 %v982_v38, %v883_v34  ;;  %v671_v40 = vpop.f32.mrb[3].mxu1 }
 0x240   : > { %731 = vst [vmem:[%s1514_s28] sm:$0xff] %v669_v37  ;;  %v672_v41 = vadd.f32 %v883_v34, %v671_v40 }
 0x241   : > { %734 = vst [vmem:[%s1514_s28 + $0x18] sm:$0xff] %v680_v39 }
 0x242   : > { %732 = vst [vmem:[%s1514_s28 + $0x8] sm:$0xff] %v672_v41 }
 0x244   : > { %v985_v42 = vpop.f32.mrb[4].mxu1 }
 0x245   : > { %v693_v43 = vadd.f32 %v985_v42, %v883_v34  ;;  %v684_v44 = vpop.f32.mrb[5].mxu1 }
 0x246   : > { %v685_v45 = vadd.f32 %v883_v34, %v684_v44  ;;  %v986_v46 = vpop.f32.mrb[6].mxu1 }
 0x247   : > { %737 = vst [vmem:[%s1514_s28 + $0x30] sm:$0xff] %v693_v43  ;;  %v696_v47 = vadd.f32 %v986_v46, %v883_v34  ;;  %v687_v48 = vpop.f32.mrb[7].mxu1 }
 0x248   : > { %735 = vst [vmem:[%s1514_s28 + $0x20] sm:$0xff] %v685_v45  ;;  %v688_v49 = vadd.f32 %v883_v34, %v687_v48 }
 0x249   : > { %738 = vst [vmem:[%s1514_s28 + $0x38] sm:$0xff] %v696_v47 }
 0x24a   : > { %736 = vst [vmem:[%s1514_s28 + $0x28] sm:$0xff] %v688_v49 }
 0x24c   : > { %v989_v50 = vpop.f32.mrb[8].mxu1 }
 0x24d   : > { %v709_v51 = vadd.f32 %v989_v50, %v883_v34  ;;  %v700_v52 = vpop.f32.mrb[9].mxu1 }
 0x24e   : > { %v701_v53 = vadd.f32 %v883_v34, %v700_v52  ;;  %v990_v54 = vpop.f32.mrb[10].mxu1 }
 0x24f   : > { %741 = vst [vmem:[%s1514_s28 + $0x50] sm:$0xff] %v709_v51  ;;  %v712_v55 = vadd.f32 %v990_v54, %v883_v34  ;;  %v703_v56 = vpop.f32.mrb[11].mxu1 }
 0x250   : > { %739 = vst [vmem:[%s1514_s28 + $0x40] sm:$0xff] %v701_v53  ;;  %v704_v57 = vadd.f32 %v883_v34, %v703_v56 }
 0x251   : > { %742 = vst [vmem:[%s1514_s28 + $0x58] sm:$0xff] %v712_v55 }
 0x252   : > { %740 = vst [vmem:[%s1514_s28 + $0x48] sm:$0xff] %v704_v57 }
 0x254   : > { %v993_v58 = vpop.f32.mrb[12].mxu1 }
 0x255   : > { %v725_v59 = vadd.f32 %v993_v58, %v883_v34  ;;  %v716_v60 = vpop.f32.mrb[13].mxu1 }
 0x256   : > { %v717_v61 = vadd.f32 %v883_v34, %v716_v60  ;;  %v994_v62 = vpop.f32.mrb[14].mxu1 }
 0x257   : > { %745 = vst [vmem:[%s1514_s28 + $0x70] sm:$0xff] %v725_v59  ;;  %v728_v63 = vadd.f32 %v994_v62, %v883_v34  ;;  %v719_v0 = vpop.f32.mrb[15].mxu1 }
 0x258   : > { %743 = vst [vmem:[%s1514_s28 + $0x60] sm:$0xff] %v717_v61  ;;  %v720_v1 = vadd.f32 %v883_v34, %v719_v0 }
 0x259   : > { %746 = vst [vmem:[%s1514_s28 + $0x78] sm:$0xff] %v728_v63 }
 0x25a   : > { %744 = vst [vmem:[%s1514_s28 + $0x68] sm:$0xff] %v720_v1 }
 0x25b   : > { %1189 = shalt.err (!%p1186_p1)
}
 0x25c   : > { %s1190_s24 = scalar_lea.hbm %s1534_s17, 2048  ;;  %s1194_s16 = scalar_lea.hbm %s1588_s5, 4096 }
 0x25d   : > { %p1191_p13 = scmp.ne.s32.totalorder %s1534_s17, %s1190_s24  ;;  %p1195_p4 = scmp.lt.u32.totalorder %s1534_s17, %s1588_s5 }
 0x25e   : > { %p1196_p5 = scmp.lt.u32.totalorder %s1194_s16, %s1190_s24  ;;  %p1198_p11 = scmp.lt.u32.totalorder %s1190_s24, %s1534_s17 }
 0x25f   : > { %p1192_p6 = pnand %p1191_p13, %p1602_p0 }
 0x260   : > { %p1197_p8 = por %p1196_p5, %p1195_p4 }
 0x261   : > { %p1193_p10 = pneg %p1192_p6 }
 0x262   : > { %p1199_p2 = por %p1198_p11, %p1197_p8 }
 0x264   : > { %p1200_p3 = pnand %p1199_p2, %p1193_p10 }
 0x266   : > { %1203 = shalt.err (!%p1200_p3)
}
 0x267   : > { %s1254_s12 = smov 128   ;;  %s1255_s30 = smov 8  }
 0x268   : > { %1005 = dma.vmem_to_hbm [thread:$0]  (%p1602_p0), %s1536_s13, 2048, %s1534_s17, %s748_s22, %s1254_s12, %s1254_s12, %s1255_s30  }
 0x269 PF: > { %s776_s11 = sand.u32 1, %s1234_s18   ;;  %p1603_p7 = scmp.ne.s32.totalorder %s1593_s25, 0 }
 0x26a   : > { %p1604_p9 = scmp.ge.s32.totalorder %s1246_s21, 2  ;;  %s777_s7 = scalar_lea.sflag [#allocation4], %s776_s11 }
 0x26c   : > { %p1019_p12 = pnand %p1604_p9, %p1603_p7 }
 0x26e   : > { %1229 = dma.done.wait (!%p1019_p12), %s777_s7, 2048  }
 0x26f   : > { %1231 = vsyncadd (!%p1019_p12), %s777_s7, 4294965248  ;;  %p19_p1 = scmp.ge.s32.totalorder %s1402_s29, 4   ;;  %s1605_s18 = smov %s1238_s19 }
 0x270   : > { %s1606_s19 = smov %s1242_s20  ;;  %s1607_s20 = smov %s1418_s27 }
 0x271   : > { %s1608_s21 = smov %s1402_s29  ;;  %21 = sbr.rel (!%p19_p1) target bundleno = 6 (0x6), region = 93 }
 0x278   :  { %782 = vsyncpa [#allocation3], 1 }
 0x279   :  { %784 = vsyncpa [#allocation3 + $0x1], 1 }
 0x27a   :  { %785 = vsyncpa [#allocation6], 1 }
 0x27b   :  { %786 = vsyncpa [#allocation4], 1 }
 0x27c   :  { %788 = vsyncpa [#allocation4 + $0x1], 1 }

</bundles_post_ra>
